<compile_context>
chip_gen: v7x
topology: tpu7x:2x2x1
jax: 0.10.0
libtpu: 0.0.40
codegen_flags: <defaults>
</compile_context>

<pallas_src>
import functools

import jax
import jax.numpy as jnp
from jax.experimental import pallas as pl
from jax.experimental.pallas import tpu as pltpu

HIDDEN = 64      # embedding_size
LANES = 128      # fused width: actor hidden (0:64) || critic hidden (64:128)


def _round_up(x, m):
    return (x + m - 1) // m * m


# ----------------------------------------------------------------------------
# Kernel: fused embedding (3x Linear+ReLU, padded to 128 lanes) + fused
# actor/critic heads (2x Linear+Tanh, Linear) for one batch tile.
# Weights live in a single resident [K_total, 128] slab, biases in [8, 128].
# ----------------------------------------------------------------------------
def _ac_kernel(obs_ref, w_ref, b_ref, out_ref, *, obs_rows):
    f32 = jnp.float32
    x = obs_ref[...]          # [T, obs_rows]
    b = b_ref[...]            # [8, 128]

    r = 0
    # embedding: Linear -> ReLU (x3); lanes 64:128 stay zero (zero-padded weights/bias)
    h = jnp.maximum(jnp.dot(x, w_ref[r:r + obs_rows, :],
                            preferred_element_type=f32) + b[0:1, :], 0.0)
    r += obs_rows
    h = jnp.maximum(jnp.dot(h, w_ref[r:r + LANES, :],
                            preferred_element_type=f32) + b[1:2, :], 0.0)
    r += LANES
    h = jnp.maximum(jnp.dot(h, w_ref[r:r + LANES, :],
                            preferred_element_type=f32) + b[2:3, :], 0.0)
    r += LANES

    # fused actor || critic heads: lanes 0:64 actor, lanes 64:128 critic
    a = jnp.tanh(jnp.dot(h, w_ref[r:r + LANES, :],
                         preferred_element_type=f32) + b[3:4, :])
    r += LANES
    a = jnp.tanh(jnp.dot(a, w_ref[r:r + LANES, :],
                         preferred_element_type=f32) + b[4:5, :])
    r += LANES

    # final layer: mean in lanes [0:action_dim], value in lane action_dim, rest zero
    out_ref[...] = jnp.dot(a, w_ref[r:r + LANES, :],
                           preferred_element_type=f32) + b[5:6, :]


# ----------------------------------------------------------------------------
# Parameter init: replicates init_params() — normal(0,1) rows, L2-row-normalized,
# zero bias.  Weights returned already transposed to [in, out].
# ----------------------------------------------------------------------------
def _init_linear(key, in_dim, out_dim):
    w = jax.random.normal(key, (out_dim, in_dim), dtype=jnp.float32)
    w = w / jnp.sqrt(jnp.sum(w * w, axis=1, keepdims=True))
    b = jnp.zeros((1, out_dim), dtype=jnp.float32)
    return w.T, b  # [in, out], [1, out]


def init_state_space_ac_params(key, obs_dim, action_dim, hidden=HIDDEN):
    ks = jax.random.split(key, 9)
    p = {}
    p["w1"], p["b1"] = _init_linear(ks[0], obs_dim, hidden)
    p["w2"], p["b2"] = _init_linear(ks[1], hidden, hidden)
    p["w3"], p["b3"] = _init_linear(ks[2], hidden, hidden)
    p["wa1"], p["ba1"] = _init_linear(ks[3], hidden, hidden)
    p["wa2"], p["ba2"] = _init_linear(ks[4], hidden, hidden)
    p["wa3"], p["ba3"] = _init_linear(ks[5], hidden, action_dim)
    p["wc1"], p["bc1"] = _init_linear(ks[6], hidden, hidden)
    p["wc2"], p["bc2"] = _init_linear(ks[7], hidden, hidden)
    p["wc3"], p["bc3"] = _init_linear(ks[8], hidden, 1)
    # GaussianHead state-independent var parameter (diagonal), init 0.
    p["var_param"] = jnp.zeros((action_dim,), dtype=jnp.float32)
    return p


# ----------------------------------------------------------------------------
# Pack the 18 weight/bias arrays into one [K_total, 128] weight slab + one
# [8, 128] bias slab (done once, outside the forward).
# ----------------------------------------------------------------------------
def pack_state_space_ac_params(p, obs_dim, action_dim, hidden=HIDDEN):
    assert action_dim + 1 <= LANES, "action_dim+1 must fit in the 128-lane output slab"
    obs_rows = _round_up(obs_dim, 8)

    def pad_block(a, rows):
        blk = jnp.zeros((rows, LANES), jnp.float32)
        return blk.at[: a.shape[0], : a.shape[1]].set(a)

    w1 = pad_block(p["w1"], obs_rows)                      # [obs_rows, 128]
    w2 = pad_block(p["w2"], LANES)                         # [128, 128]
    w3 = pad_block(p["w3"], LANES)
    # head layer 1: [wa1 | wc1] in top 64 rows
    wh1 = jnp.zeros((LANES, LANES), jnp.float32)
    wh1 = wh1.at[:hidden, :hidden].set(p["wa1"]).at[:hidden, hidden:2 * hidden].set(p["wc1"])
    # head layer 2: block-diagonal(wa2, wc2)
    wh2 = jnp.zeros((LANES, LANES), jnp.float32)
    wh2 = wh2.at[:hidden, :hidden].set(p["wa2"]).at[hidden:, hidden:].set(p["wc2"])
    # head layer 3: mean in lanes [0:A], value in lane A
    wh3 = jnp.zeros((LANES, LANES), jnp.float32)
    wh3 = wh3.at[:hidden, :action_dim].set(p["wa3"])
    wh3 = wh3.at[hidden:, action_dim:action_dim + 1].set(p["wc3"])

    w_slab = jnp.concatenate([w1, w2, w3, wh1, wh2, wh3], axis=0)

    b_slab = jnp.zeros((8, LANES), jnp.float32)
    b_slab = b_slab.at[0, :hidden].set(p["b1"][0])
    b_slab = b_slab.at[1, :hidden].set(p["b2"][0])
    b_slab = b_slab.at[2, :hidden].set(p["b3"][0])
    b_slab = b_slab.at[3, :hidden].set(p["ba1"][0]).at[3, hidden:2 * hidden].set(p["bc1"][0])
    b_slab = b_slab.at[4, :hidden].set(p["ba2"][0]).at[4, hidden:2 * hidden].set(p["bc2"][0])
    b_slab = b_slab.at[5, :action_dim].set(p["ba3"][0])
    b_slab = b_slab.at[5, action_dim:action_dim + 1].set(p["bc3"][0])

    return {"w_slab": w_slab, "b_slab": b_slab, "var_param": p["var_param"]}


# ----------------------------------------------------------------------------
# Wrapper: one big batch tile (grid=1) for small B; 512-row tiles (parallel
# grid, sharded across v7x's 2 TCs) for large B.  Weights/biases stay resident.
# ----------------------------------------------------------------------------
@functools.partial(jax.jit, static_argnames=("action_dim", "batch_tile"))
def state_space_ac_forward(obs, packed, memory, action_dim, batch_tile=None):
    B, obs_dim = obs.shape
    w_slab = packed["w_slab"]
    b_slab = packed["b_slab"]
    obs_rows = w_slab.shape[0] - 5 * LANES

    obs = obs.astype(jnp.float32)
    if obs_dim < obs_rows:  # pad features to a sublane multiple (zero weights match)
        obs = jnp.pad(obs, ((0, 0), (0, obs_rows - obs_dim)))

    if batch_tile is None:
        batch_tile = B if B <= 1024 else 512
    assert B % batch_tile == 0
    grid = (B // batch_tile,)

    kernel = functools.partial(_ac_kernel, obs_rows=obs_rows)

    out = pl.pallas_call(
        kernel,
        out_shape=jax.ShapeDtypeStruct((B, LANES), jnp.float32),
        grid=grid,
        in_specs=[
            pl.BlockSpec((batch_tile, obs_rows), lambda i: (i, 0)),
            pl.BlockSpec(w_slab.shape, lambda i: (0, 0)),   # resident weight slab
            pl.BlockSpec(b_slab.shape, lambda i: (0, 0)),   # resident bias slab
        ],
        out_specs=pl.BlockSpec((batch_tile, LANES), lambda i: (i, 0)),
        compiler_params=pltpu.CompilerParams(dimension_semantics=("parallel",)),
    )(obs, w_slab, b_slab)

    mean = out[:, :action_dim]
    value = out[:, action_dim]

    # GaussianHeadWithStateIndependentCovariance with var_func = exp(2*x):
    #   var = exp(2 * var_param); std = sqrt(var) = exp(var_param)   (state-independent)
    std = jnp.exp(packed["var_param"])

    # torch: dist = Independent(Normal(mean, std), 1); value = x.squeeze(1)
    # TODO(synk): torch.distributions object has no Pallas/JAX equivalent; return (mean, std).
    dist = {"mean": mean, "std": std}
    return dist, value, memory


# ----------------------------------------------------------------------------
# Pure-JAX reference (unfused) for a correctness sanity check.
# ----------------------------------------------------------------------------
def _reference_forward(obs, p):
    hp = jax.lax.Precision.HIGHEST
    x = obs.astype(jnp.float32)
    h = jnp.maximum(jnp.dot(x, p["w1"], precision=hp) + p["b1"], 0.0)
    h = jnp.maximum(jnp.dot(h, p["w2"], precision=hp) + p["b2"], 0.0)
    h = jnp.maximum(jnp.dot(h, p["w3"], precision=hp) + p["b3"], 0.0)
    a = jnp.tanh(jnp.dot(h, p["wa1"], precision=hp) + p["ba1"])
    a = jnp.tanh(jnp.dot(a, p["wa2"], precision=hp) + p["ba2"])
    mean = jnp.dot(a, p["wa3"], precision=hp) + p["ba3"]
    c = jnp.tanh(jnp.dot(h, p["wc1"], precision=hp) + p["bc1"])
    c = jnp.tanh(jnp.dot(c, p["wc2"], precision=hp) + p["bc2"])
    value = (jnp.dot(c, p["wc3"], precision=hp) + p["bc3"])[:, 0]
    return mean, value


if __name__ == "__main__":
    OBS_DIM = 16      # obs_space.low.size
    ACTION_DIM = 4    # action_space.low.size
    B = 16

    key = jax.random.PRNGKey(0)
    k_params, k_obs = jax.random.split(key)

    params = init_state_space_ac_params(k_params, OBS_DIM, ACTION_DIM)
    packed = pack_state_space_ac_params(params, OBS_DIM, ACTION_DIM)

    obs = jax.random.normal(k_obs, (B, OBS_DIM), dtype=jnp.float32)
    memory = jnp.zeros((B, 2 * HIDDEN), dtype=jnp.float32)  # memory_size = 2 * embedding_size

    dist, value, memory_out = state_space_ac_forward(obs, packed, memory, action_dim=ACTION_DIM)
    jax.block_until_ready((dist["mean"], dist["std"], value, memory_out))

    assert dist["mean"].shape == (B, ACTION_DIM)
    assert dist["std"].shape == (ACTION_DIM,)
    assert value.shape == (B,)
    assert memory_out.shape == (B, 2 * HIDDEN)

    # sanity check against the unfused pure-JAX reference (f32 tolerances)
    ref_mean, ref_value = _reference_forward(obs, params)
    assert jnp.allclose(dist["mean"], ref_mean, atol=1e-2, rtol=1e-2)
    assert jnp.allclose(value, ref_value, atol=1e-2, rtol=1e-2)

    print("KERNEL_OK")
</pallas_src>

<mosaic_0001>
module attributes {stable_mosaic.version = 11 : i64} {
  func.func @_ac_kernel(%arg0: i32, %arg1: memref<16x16xf32, #tpu.memory_space<vmem>>, %arg2: memref<656x128xf32, #tpu.memory_space<vmem>>, %arg3: memref<8x128xf32, #tpu.memory_space<vmem>>, %arg4: memref<16x128xf32, #tpu.memory_space<vmem>>) attributes {dimension_semantics = [#tpu.dimension_semantics<parallel>], iteration_bounds = array<i64: 1>, scalar_prefetch = 0 : i64, scratch_operands = 0 : i64, tpu.core_type = #tpu.core_type<tc>, window_params = [{transform_indices = @transform_0, window_bounds = array<i64: 16, 16>}, {pipeline_mode = #tpu.pipeline_mode<synchronous>, transform_indices = @transform_1, window_bounds = array<i64: 656, 128>}, {pipeline_mode = #tpu.pipeline_mode<synchronous>, transform_indices = @transform_2, window_bounds = array<i64: 8, 128>}, {transform_indices = @transform_3, window_bounds = array<i64: 16, 128>}]} {
    %c0 = arith.constant 0 : index
    %c0_0 = arith.constant 0 : index
    %0 = vector.load %arg1[%c0, %c0_0] : memref<16x16xf32, #tpu.memory_space<vmem>>, vector<16x16xf32>
    %c0_1 = arith.constant 0 : index
    %c0_2 = arith.constant 0 : index
    %1 = vector.load %arg3[%c0_1, %c0_2] : memref<8x128xf32, #tpu.memory_space<vmem>>, vector<8x128xf32>
    %c0_3 = arith.constant 0 : index
    %c0_4 = arith.constant 0 : index
    %2 = vector.load %arg2[%c0_3, %c0_4] : memref<656x128xf32, #tpu.memory_space<vmem>>, vector<16x128xf32>
    %cst = arith.constant dense<0.000000e+00> : vector<16x128xf32>
    %3 = tpu.matmul %0, %2, %cst {dimension_numbers = #tpu.dot_dimension_numbers<[1], [0], [0], [1], [0, 0, 1, 1], [], []>} : vector<16x16xf32>, vector<16x128xf32>, vector<16x128xf32> -> vector<16x128xf32>
    %4 = vector.extract_strided_slice %1 {offsets = [0, 0], sizes = [1, 128], strides = [1, 1]} : vector<8x128xf32> to vector<1x128xf32>
    %5 = vector.broadcast %4 : vector<1x128xf32> to vector<16x128xf32>
    %6 = arith.addf %3, %5 : vector<16x128xf32>
    %cst_5 = arith.constant 0.000000e+00 : f32
    %7 = vector.broadcast %cst_5 : f32 to vector<16x128xf32>
    %8 = arith.maximumf %6, %7 : vector<16x128xf32>
    %c16 = arith.constant 16 : index
    %c0_6 = arith.constant 0 : index
    %9 = vector.load %arg2[%c16, %c0_6] : memref<656x128xf32, #tpu.memory_space<vmem>>, vector<128x128xf32>
    %cst_7 = arith.constant dense<0.000000e+00> : vector<16x128xf32>
    %10 = tpu.matmul %8, %9, %cst_7 {dimension_numbers = #tpu.dot_dimension_numbers<[1], [0], [0], [1], [0, 0, 1, 1], [], []>} : vector<16x128xf32>, vector<128x128xf32>, vector<16x128xf32> -> vector<16x128xf32>
    %11 = vector.extract_strided_slice %1 {offsets = [1, 0], sizes = [1, 128], strides = [1, 1]} : vector<8x128xf32> to vector<1x128xf32>
    %12 = vector.broadcast %11 : vector<1x128xf32> to vector<16x128xf32>
    %13 = arith.addf %10, %12 : vector<16x128xf32>
    %cst_8 = arith.constant 0.000000e+00 : f32
    %14 = vector.broadcast %cst_8 : f32 to vector<16x128xf32>
    %15 = arith.maximumf %13, %14 : vector<16x128xf32>
    %c144 = arith.constant 144 : index
    %c0_9 = arith.constant 0 : index
    %16 = vector.load %arg2[%c144, %c0_9] : memref<656x128xf32, #tpu.memory_space<vmem>>, vector<128x128xf32>
    %cst_10 = arith.constant dense<0.000000e+00> : vector<16x128xf32>
    %17 = tpu.matmul %15, %16, %cst_10 {dimension_numbers = #tpu.dot_dimension_numbers<[1], [0], [0], [1], [0, 0, 1, 1], [], []>} : vector<16x128xf32>, vector<128x128xf32>, vector<16x128xf32> -> vector<16x128xf32>
    %18 = vector.extract_strided_slice %1 {offsets = [2, 0], sizes = [1, 128], strides = [1, 1]} : vector<8x128xf32> to vector<1x128xf32>
    %19 = vector.broadcast %18 : vector<1x128xf32> to vector<16x128xf32>
    %20 = arith.addf %17, %19 : vector<16x128xf32>
    %cst_11 = arith.constant 0.000000e+00 : f32
    %21 = vector.broadcast %cst_11 : f32 to vector<16x128xf32>
    %22 = arith.maximumf %20, %21 : vector<16x128xf32>
    %c272 = arith.constant 272 : index
    %c0_12 = arith.constant 0 : index
    %23 = vector.load %arg2[%c272, %c0_12] : memref<656x128xf32, #tpu.memory_space<vmem>>, vector<128x128xf32>
    %cst_13 = arith.constant dense<0.000000e+00> : vector<16x128xf32>
    %24 = tpu.matmul %22, %23, %cst_13 {dimension_numbers = #tpu.dot_dimension_numbers<[1], [0], [0], [1], [0, 0, 1, 1], [], []>} : vector<16x128xf32>, vector<128x128xf32>, vector<16x128xf32> -> vector<16x128xf32>
    %25 = vector.extract_strided_slice %1 {offsets = [3, 0], sizes = [1, 128], strides = [1, 1]} : vector<8x128xf32> to vector<1x128xf32>
    %26 = vector.broadcast %25 : vector<1x128xf32> to vector<16x128xf32>
    %27 = arith.addf %24, %26 : vector<16x128xf32>
    %28 = math.tanh %27 : vector<16x128xf32>
    %c400 = arith.constant 400 : index
    %c0_14 = arith.constant 0 : index
    %29 = vector.load %arg2[%c400, %c0_14] : memref<656x128xf32, #tpu.memory_space<vmem>>, vector<128x128xf32>
    %cst_15 = arith.constant dense<0.000000e+00> : vector<16x128xf32>
    %30 = tpu.matmul %28, %29, %cst_15 {dimension_numbers = #tpu.dot_dimension_numbers<[1], [0], [0], [1], [0, 0, 1, 1], [], []>} : vector<16x128xf32>, vector<128x128xf32>, vector<16x128xf32> -> vector<16x128xf32>
    %31 = vector.extract_strided_slice %1 {offsets = [4, 0], sizes = [1, 128], strides = [1, 1]} : vector<8x128xf32> to vector<1x128xf32>
    %32 = vector.broadcast %31 : vector<1x128xf32> to vector<16x128xf32>
    %33 = arith.addf %30, %32 : vector<16x128xf32>
    %34 = math.tanh %33 : vector<16x128xf32>
    %c528 = arith.constant 528 : index
    %c0_16 = arith.constant 0 : index
    %35 = vector.load %arg2[%c528, %c0_16] : memref<656x128xf32, #tpu.memory_space<vmem>>, vector<128x128xf32>
    %cst_17 = arith.constant dense<0.000000e+00> : vector<16x128xf32>
    %36 = tpu.matmul %34, %35, %cst_17 {dimension_numbers = #tpu.dot_dimension_numbers<[1], [0], [0], [1], [0, 0, 1, 1], [], []>} : vector<16x128xf32>, vector<128x128xf32>, vector<16x128xf32> -> vector<16x128xf32>
    %37 = vector.extract_strided_slice %1 {offsets = [5, 0], sizes = [1, 128], strides = [1, 1]} : vector<8x128xf32> to vector<1x128xf32>
    %38 = vector.broadcast %37 : vector<1x128xf32> to vector<16x128xf32>
    %39 = arith.addf %36, %38 : vector<16x128xf32>
    %c0_18 = arith.constant 0 : index
    %c0_19 = arith.constant 0 : index
    %40 = vector.load %arg4[%c0_18, %c0_19] : memref<16x128xf32, #tpu.memory_space<vmem>>, vector<16x128xf32>
    tpu.vector_store %arg4[%c0_18, %c0_19], %39 {strides = array<i32>} : memref<16x128xf32, #tpu.memory_space<vmem>>, vector<16x128xf32>,
    return
  }
  func.func @transform_0(%arg0: i32) -> (i32, i32) {
    %c0_i32 = arith.constant 0 : i32
    %c0_i32_0 = arith.constant 0 : i32
    return %arg0, %c0_i32 : i32, i32
  }
  func.func @transform_1(%arg0: i32) -> (i32, i32) {
    %c0_i32 = arith.constant 0 : i32
    %c0_i32_0 = arith.constant 0 : i32
    %c0_i32_1 = arith.constant 0 : i32
    return %c0_i32, %c0_i32_0 : i32, i32
  }
  func.func @transform_2(%arg0: i32) -> (i32, i32) {
    %c0_i32 = arith.constant 0 : i32
    %c0_i32_0 = arith.constant 0 : i32
    %c0_i32_1 = arith.constant 0 : i32
    return %c0_i32, %c0_i32_0 : i32, i32
  }
  func.func @transform_3(%arg0: i32) -> (i32, i32) {
    %c0_i32 = arith.constant 0 : i32
    %c0_i32_0 = arith.constant 0 : i32
    return %arg0, %c0_i32 : i32, i32
  }
}

</mosaic_0001>

<bundles_post_ra>
// kernel: state_space_ac_forward.1
= control target key start
LH: loop header
LB: loop body
LE: loop exit
PB: predicated region body
PF: predicated region fallthrough
CT: control target
= control target key end

     0   :  { %8 = vsyncpa [#allocation3], 0  ;;  %s1254_s0 = inlined_call_operand.hbm [shape: f32[16,16], index: 0, kind: input, shape index: {}]   ;;  %s1255_s1 = inlined_call_operand.hbm [shape: f32[656,128], index: 1, kind: input, shape index: {}]   ;;  %s1256_s2 = inlined_call_operand.hbm [shape: f32[8,128], index: 2, kind: input, shape index: {}]   ;;  %s1257_s3 = inlined_call_operand.vmem [shape: f32[16,128], index: 3, kind: output, shape index: {}]  }
   0x1   :  { %9 = vsyncpa [#allocation5], 0  ;;  %s1162_s12 = smov [#allocation4]   ;;  %s1163_s14 = smov [#allocation2]  }
   0x2   :  { %s27_s13 = sshll.u32 %s1162_s12, 4  ;;  %s15_s15 = sshll.u32 %s1163_s14, 4  ;;  %s28_s13 = int_to_ptr.vmem [resolvable:$true] %s27_s13  ;;  %s1187_s15 = int_to_ptr.vmem [resolvable:$true] %s15_s15 }
   0x3   :  { %s1092_s18 = scalar_lea.hbm %s1255_s1, 10496 }
   0x4   :  { %p1093_p0 = scmp.ne.s32.totalorder %s1255_s1, %s1092_s18  ;;  %p1096_p1 = scmp.lt.u32.totalorder %s1092_s18, %s1255_s1 }
   0x6   :  { %p1098_p2 = pnand %p1096_p1, %p1093_p0 }
   0x8   :  { %1101 = shalt.err (!%p1098_p2)
}
   0x9   :  { %s1102_s23 = scalar_lea.vmem %s28_s13, 10496  ;;  %p1107_p4 = scmp.lt.s32.totalorder %s28_s13, %s28_s13 }
   0xa   :  { %p1103_p3 = scmp.ne.s32.totalorder %s28_s13, %s1102_s23  ;;  %p1108_p5 = scmp.lt.s32.totalorder %s1102_s23, %s1102_s23 }
   0xc   :  { %p1109_p6 = por %p1108_p5, %p1107_p4 }
   0xe   :  { %p1110_p7 = pnand %p1109_p6, %p1103_p3 }
  0x10   :  { %1113 = shalt.err (!%p1110_p7)
}
  0x11   :  { %s1164_s24 = smov 128   ;;  %s1165_s25 = smov 8  }
  0x12   :  { %33 = dma.hbm_to_vmem [thread:$0]  %s1255_s1, 10496, %s28_s13, [#allocation5], %s1164_s24, %s1164_s24, %s1165_s25  }
  0x13   :  { %s1114_s30 = scalar_lea.hbm %s1254_s0, 256 }
  0x14   :  { %p1115_p8 = scmp.ne.s32.totalorder %s1254_s0, %s1114_s30  ;;  %p1118_p9 = scmp.lt.u32.totalorder %s1114_s30, %s1254_s0 }
  0x16   :  { %p1120_p10 = pnand %p1118_p9, %p1115_p8 }
  0x18   :  { %1123 = shalt.err (!%p1120_p10)
}
  0x19   :  { %s1124_s8 = scalar_lea.vmem %s1187_s15, 256  ;;  %p1129_p12 = scmp.lt.s32.totalorder %s1187_s15, %s1187_s15 }
  0x1a   :  { %p1125_p11 = scmp.ne.s32.totalorder %s1187_s15, %s1124_s8  ;;  %p1130_p13 = scmp.lt.s32.totalorder %s1124_s8, %s1124_s8 }
  0x1c   :  { %p1131_p0 = por %p1130_p13, %p1129_p12 }
  0x1e   :  { %p1132_p1 = pnand %p1131_p0, %p1125_p11 }
  0x20   :  { %1135 = shalt.err (!%p1132_p1)
}
  0x21   :  { %21 = dma.hbm_to_vmem [thread:$0]  %s1254_s0, 256, %s1187_s15, [#allocation3], %s1164_s24, %s1164_s24, %s1165_s25  }
  0x22   :  { %s1166_s10 = smov [#allocation6]   ;;  %s1136_s14 = scalar_lea.hbm %s1256_s2, 128 }
  0x23   :  { %s40_s11 = sshll.u32 %s1166_s10, 4  ;;  %p1137_p2 = scmp.ne.s32.totalorder %s1256_s2, %s1136_s14  ;;  %s41_s11 = int_to_ptr.vmem [resolvable:$true] %s40_s11 }
  0x24   :  { %p1140_p3 = scmp.lt.u32.totalorder %s1136_s14, %s1256_s2 }
  0x26   :  { %p1142_p4 = pnand %p1140_p3, %p1137_p2 }
  0x28   :  { %1145 = shalt.err (!%p1142_p4)
}
  0x29   :  { %s1146_s20 = scalar_lea.vmem %s41_s11, 128  ;;  %p1151_p6 = scmp.lt.s32.totalorder %s41_s11, %s41_s11 }
  0x2a   :  { %p1147_p5 = scmp.ne.s32.totalorder %s41_s11, %s1146_s20  ;;  %p1152_p7 = scmp.lt.s32.totalorder %s1146_s20, %s1146_s20 }
  0x2c   :  { %p1153_p8 = por %p1152_p7, %p1151_p6 }
  0x2e   :  { %p1154_p9 = pnand %p1153_p8, %p1147_p5 }
  0x30   :  { %1157 = shalt.err (!%p1154_p9)
}
  0x31   :  { %43 = dma.hbm_to_vmem [thread:$0]  %s1256_s2, 128, %s41_s11, [#allocation5]  }
  0x32   :  { %1158 = dma.done.wait [#allocation3], 256  }
  0x33   :  { %1159 = vsyncadd [#allocation3], 4294967040 }
  0x34   :  { %1160 = dma.done.wait [#allocation5], 10624  }
  0x35   :  { %1161 = vsyncadd [#allocation5], 4294956672  ;;  %vm62_vm0 = vcmask 130048   ;;  %v56_v0 = vld [vmem:[#allocation4] sm:$0xff]  ;;  %v57_v1 = vld [vmem:[#allocation4 + $0x8] sm:$0xff]  ;;  %v58_v50 = vlaneseq }
  0x36   :  { %v53_v2 = vld [vmem:[#allocation2] sm:$0xff]  ;;  %v915_v3 = vpack.c.bf16 %v57_v1, %v56_v0  ;;  %v147_v5 = vld [vmem:[#allocation4 + $0x18] sm:$0xff]  ;;  %v148_v7 = vld [vmem:[#allocation4 + $0x20] sm:$0xff] }
  0x37   :  { %737 = vmatprep.mubr.msk.f32.mxu0 %vm62_vm0, %v53_v2  ;;  %v146_v4 = vld [vmem:[#allocation4 + $0x10] sm:$0xff]  ;;  %v149_v8 = vld [vmem:[#allocation4 + $0x28] sm:$0xff]  ;;  %v151_v11 = vld [vmem:[#allocation4 + $0x38] sm:$0xff]  ;;  %v1232_v51 = vshrl.u32 %v58_v50, 7 }
  0x38   :  { %v919_v6 = vpack.c.bf16 %v147_v5, %v146_v4  ;;  %916 = vmatprep.subr.bf16.mxu0 %v915_v3  ;;  %v923_v9 = vpack.c.bf16 %v149_v8, %v148_v7  ;;  %v150_v10 = vld [vmem:[#allocation4 + $0x30] sm:$0xff]  ;;  %v54_v12 = vld [vmem:[#allocation2 + $0x8] sm:$0xff]  ;;  %v152_v14 = vld [vmem:[#allocation4 + $0x40] sm:$0xff] }
  0x39   :  { %918 = vmatpush3.bf16.msra.mxu0 %v915_v3  ;;  %v927_v13 = vpack.c.bf16 %v151_v11, %v150_v10  ;;  %v153_v15 = vld [vmem:[#allocation4 + $0x48] sm:$0xff]  ;;  %v154_v17 = vld [vmem:[#allocation4 + $0x50] sm:$0xff]  ;;  %v155_v18 = vld [vmem:[#allocation4 + $0x58] sm:$0xff]  ;;  %v60_v52 = vsub.s32 0, %v1232_v51 }
  0x3a   :  { %920 = vmatprep.subr.bf16.mxu1 %v919_v6  ;;  %v931_v16 = vpack.c.bf16 %v153_v15, %v152_v14  ;;  %v935_v19 = vpack.c.bf16 %v155_v18, %v154_v17  ;;  %v156_v20 = vld [vmem:[#allocation4 + $0x60] sm:$0xff]  ;;  %v157_v21 = vld [vmem:[#allocation4 + $0x68] sm:$0xff]  ;;  %v158_v23 = vld [vmem:[#allocation4 + $0x70] sm:$0xff] }
  0x3b   :  { %922 = vmatpush3.bf16.msra.mxu1 %v919_v6  ;;  %v939_v22 = vpack.c.bf16 %v157_v21, %v156_v20  ;;  %v159_v24 = vld [vmem:[#allocation4 + $0x78] sm:$0xff]  ;;  %v160_v26 = vld [vmem:[#allocation4 + $0x80] sm:$0xff]  ;;  %v161_v27 = vld [vmem:[#allocation4 + $0x88] sm:$0xff]  ;;  %v164_v21 = vsub.s32 1, %v1232_v51 }
  0x3c   :  { %924 = vmatprep.subr.bf16.mxu1 %v923_v9  ;;  %738 = vmatmul.mubr.msk.f32.vlgmr.msra.gmra.mrb[0].mxu0 %vm62_vm0, %v54_v12  ;;  %v943_v25 = vpack.c.bf16 %v159_v24, %v158_v23  ;;  %v947_v28 = vpack.c.bf16 %v161_v27, %v160_v26  ;;  %v243_v29 = vld [vmem:[#allocation4 + $0x90] sm:$0xff]  ;;  %v244_v30 = vld [vmem:[#allocation4 + $0x98] sm:$0xff]  ;;  %v245_v31 = vld [vmem:[#allocation4 + $0xa0] sm:$0xff] }
  0x3d   :  { %v951_v32 = vpack.c.bf16 %v244_v30, %v243_v29  ;;  %v246_v33 = vld [vmem:[#allocation4 + $0xa8] sm:$0xff]  ;;  %v247_v35 = vld [vmem:[#allocation4 + $0xb0] sm:$0xff]  ;;  %v248_v36 = vld [vmem:[#allocation4 + $0xb8] sm:$0xff] }
  0x3e   :  { %v955_v34 = vpack.c.bf16 %v246_v33, %v245_v31  ;;  %v959_v37 = vpack.c.bf16 %v248_v36, %v247_v35  ;;  %v249_v38 = vld [vmem:[#allocation4 + $0xc0] sm:$0xff]  ;;  %v250_v39 = vld [vmem:[#allocation4 + $0xc8] sm:$0xff]  ;;  %v251_v41 = vld [vmem:[#allocation4 + $0xd0] sm:$0xff] }
  0x3f   :  { %926 = vmatpush3.bf16.msra.mxu1 %v923_v9  ;;  %952 = vmatprep.subr.bf16.mxu0 %v951_v32  ;;  %v963_v40 = vpack.c.bf16 %v250_v39, %v249_v38  ;;  %v252_v42 = vld [vmem:[#allocation4 + $0xd8] sm:$0xff]  ;;  %v253_v44 = vld [vmem:[#allocation4 + $0xe0] sm:$0xff]  ;;  %v254_v45 = vld [vmem:[#allocation4 + $0xe8] sm:$0xff] }
  0x40   :  { %928 = vmatprep.subr.bf16.mxu1 %v927_v13  ;;  %954 = vmatpush3.bf16.msra.mxu0 %v951_v32  ;;  %v967_v43 = vpack.c.bf16 %v252_v42, %v251_v41  ;;  %v971_v46 = vpack.c.bf16 %v254_v45, %v253_v44  ;;  %v255_v47 = vld [vmem:[#allocation4 + $0xf0] sm:$0xff]  ;;  %v256_v48 = vld [vmem:[#allocation4 + $0xf8] sm:$0xff]  ;;  %v257_v61 = vld [vmem:[#allocation4 + $0x100] sm:$0xff]  ;;  %v261_v44 = vsub.s32 2, %v1232_v51 }
  0x41   :  { %956 = vmatprep.subr.bf16.mxu0 %v955_v34  ;;  %v975_v49 = vpack.c.bf16 %v256_v48, %v255_v47  ;;  %v1235_v53 = vld [vmem:[#allocation6] sm:$0xff]  ;;  %v258_v62 = vld [vmem:[#allocation4 + $0x108] sm:$0xff]  ;;  %v341_v1 = vld [vmem:[#allocation4 + $0x118] sm:$0xff] }
  0x42   :  { %v61_v54 = vrot.slane %v1235_v53, %v60_v52  ;;  %v979_v63 = vpack.c.bf16 %v258_v62, %v257_v61  ;;  %v340_v0 = vld [vmem:[#allocation4 + $0x110] sm:$0xff]  ;;  %v342_v2 = vld [vmem:[#allocation4 + $0x120] sm:$0xff]  ;;  %v343_v4 = vld [vmem:[#allocation4 + $0x128] sm:$0xff]  ;;  %v262_v45 = vrot.slane %v1235_v53, %v261_v44 }
  0x43   :  { %930 = vmatpush3.bf16.msra.mxu1 %v927_v13  ;;  %v983_v3 = vpack.c.bf16 %v341_v1, %v340_v0  ;;  %v987_v5 = vpack.c.bf16 %v343_v4, %v342_v2  ;;  %v344_v6 = vld [vmem:[#allocation4 + $0x130] sm:$0xff]  ;;  %v345_v7 = vld [vmem:[#allocation4 + $0x138] sm:$0xff]  ;;  %v346_v9 = vld [vmem:[#allocation4 + $0x140] sm:$0xff] }
  0x44   :  { %932 = vmatprep.subr.bf16.mxu1 %v931_v16  ;;  %958 = vmatpush3.bf16.msra.mxu0 %v955_v34  ;;  %v991_v8 = vpack.c.bf16 %v345_v7, %v344_v6  ;;  %v347_v10 = vld [vmem:[#allocation4 + $0x148] sm:$0xff]  ;;  %v348_v12 = vld [vmem:[#allocation4 + $0x150] sm:$0xff]  ;;  %v349_v13 = vld [vmem:[#allocation4 + $0x158] sm:$0xff] }
  0x45   :  { %960 = vmatprep.subr.bf16.mxu0 %v959_v37  ;;  %v995_v11 = vpack.c.bf16 %v347_v10, %v346_v9  ;;  %v999_v14 = vpack.c.bf16 %v349_v13, %v348_v12  ;;  %v350_v15 = vld [vmem:[#allocation4 + $0x160] sm:$0xff]  ;;  %v352_v18 = vld [vmem:[#allocation4 + $0x170] sm:$0xff]  ;;  %v355_v30 = vld [vmem:[#allocation4 + $0x188] sm:$0xff] }
  0x46   :  { %v354_v29 = vld [vmem:[#allocation4 + $0x180] sm:$0xff]  ;;  %v437_v32 = vld [vmem:[#allocation4 + $0x190] sm:$0xff]  ;;  %v438_v33 = vld [vmem:[#allocation4 + $0x198] sm:$0xff] }
  0x47   :  { %934 = vmatpush3.bf16.msra.mxu1 %v931_v16  ;;  %v351_v16 = vld [vmem:[#allocation4 + $0x168] sm:$0xff]  ;;  %v1011_v31 = vpack.c.bf16 %v355_v30, %v354_v29  ;;  %v439_v34 = vld [vmem:[#allocation4 + $0x1a0] sm:$0xff]  ;;  %v1015_v35 = vpack.c.bf16 %v438_v33, %v437_v32  ;;  %v441_v38 = vld [vmem:[#allocation4 + $0x1b0] sm:$0xff] }
  0x48   :  { %936 = vmatprep.subr.bf16.mxu1 %v935_v19  ;;  %962 = vmatpush3.bf16.msra.mxu0 %v959_v37  ;;  %v1003_v17 = vpack.c.bf16 %v351_v16, %v350_v15  ;;  %v440_v36 = vld [vmem:[#allocation4 + $0x1a8] sm:$0xff]  ;;  %v442_v39 = vld [vmem:[#allocation4 + $0x1b8] sm:$0xff]  ;;  %v443_v41 = vld [vmem:[#allocation4 + $0x1c0] sm:$0xff] }
  0x49   :  { %964 = vmatprep.subr.bf16.mxu0 %v963_v40  ;;  %v1019_v37 = vpack.c.bf16 %v440_v36, %v439_v34  ;;  %v444_v42 = vld [vmem:[#allocation4 + $0x1c8] sm:$0xff]  ;;  %v450_v61 = vld [vmem:[#allocation4 + $0x1f8] sm:$0xff]  ;;  %v451_v62 = vld [vmem:[#allocation4 + $0x200] sm:$0xff]  ;;  %v455_v34 = vsub.s32 4, %v1232_v51 }
  0x4a   :  { %v452_v0 = vld [vmem:[#allocation4 + $0x208] sm:$0xff]  ;;  %v534_v2 = vld [vmem:[#allocation4 + $0x210] sm:$0xff]  ;;  %v536_v4 = vld [vmem:[#allocation4 + $0x220] sm:$0xff] }
  0x4b   :  { %938 = vmatpush3.bf16.msra.mxu1 %v935_v19  ;;  %v353_v19 = vld [vmem:[#allocation4 + $0x178] sm:$0xff]  ;;  %v1043_v1 = vpack.c.bf16 %v452_v0, %v451_v62  ;;  %v537_v6 = vld [vmem:[#allocation4 + $0x228] sm:$0xff]  ;;  %v548_v30 = vld [vmem:[#allocation4 + $0x280] sm:$0xff] }
  0x4c   :  { %940 = vmatprep.subr.bf16.mxu1 %v939_v22  ;;  %966 = vmatpush3.bf16.msra.mxu0 %v963_v40  ;;  %v1007_v20 = vpack.c.bf16 %v353_v19, %v352_v18  ;;  %v1023_v40 = vpack.c.bf16 %v442_v39, %v441_v38  ;;  %v1051_v7 = vpack.c.bf16 %v537_v6, %v536_v4  ;;  %v539_v9 = vld [vmem:[#allocation4 + $0x238] sm:$0xff]  ;;  %v541_v12 = vld [vmem:[#allocation4 + $0x248] sm:$0xff] }
  0x4d   :  { %968 = vmatprep.subr.bf16.mxu0 %v967_v43  ;;  %v547_v29 = vld [vmem:[#allocation4 + $0x278] sm:$0xff]  ;;  %v549_v32 = vld [vmem:[#allocation4 + $0x288] sm:$0xff] }
  0x4e   :  { %v1075_v33 = vpack.c.bf16 %v549_v32, %v548_v30 }
  0x4f   :  { %942 = vmatpush3.bf16.msra.mxu1 %v939_v22  ;;  %v165_v22 = vrot.slane %v1235_v53, %v164_v21 }
  0x50   :  { %944 = vmatprep.subr.bf16.mxu1 %v943_v25  ;;  %970 = vmatpush3.bf16.msra.mxu0 %v967_v43  ;;  %v1027_v43 = vpack.c.bf16 %v444_v42, %v443_v41  ;;  %v552_v42 = vsub.s32 5, %v1232_v51 }
  0x51   :  { %972 = vmatprep.subr.bf16.mxu0 %v971_v46 }
  0x53   :  { %946 = vmatpush3.bf16.msra.mxu1 %v943_v25 }
  0x54   :  { %948 = vmatprep.subr.bf16.mxu1 %v947_v28  ;;  %974 = vmatpush3.bf16.msra.mxu0 %v971_v46 }
  0x55   :  { %976 = vmatprep.subr.bf16.mxu0 %v975_v49 }
  0x57   :  { %950 = vmatpush3.bf16.msra.mxu1 %v947_v28 }
  0x58   :  { %978 = vmatpush3.bf16.msra.mxu0 %v975_v49  ;;  %984 = vmatprep.subr.bf16.mxu1 %v983_v3 }
  0x59   :  { %980 = vmatprep.subr.bf16.mxu0 %v979_v63 }
  0x5c   :  { %982 = vmatpush3.bf16.msra.mxu0 %v979_v63 }
  0x5d   :  { %1016 = vmatprep.subr.bf16.mxu0 %v1015_v35 }
 0x10f   :  { %v739_v55 = vpop.f32.mrb[0].mxu0 }
 0x110   :  { %v141_v56 = vadd.f32 %v739_v55, %v61_v54  ;;  %v135_v57 = vpop.f32.mrb[1].mxu0  ;;  %v446_v55 = vld [vmem:[#allocation4 + $0x1d8] sm:$0xff] }
 0x111   :  { %v136_v58 = vadd.f32 %v135_v57, %v61_v54  ;;  %v445_v54 = vld [vmem:[#allocation4 + $0x1d0] sm:$0xff]  ;;  %v447_v57 = vld [vmem:[#allocation4 + $0x1e0] sm:$0xff] }
 0x112   :  { %v145_v60 = vmax.f32 %v141_v56, 0.0  ;;  %v1031_v56 = vpack.c.bf16 %v446_v55, %v445_v54 }
 0x113   :  { %v144_v59 = vmax.f32 %v136_v58, 0.0  ;;  %v448_v58 = vld [vmem:[#allocation4 + $0x1e8] sm:$0xff] }
 0x115   :  { %772 = vmatprep.mubr.f32.mxu1 %v144_v59  ;;  %v1035_v59 = vpack.c.bf16 %v448_v58, %v447_v57 }
 0x116   :  { %773 = vmatmul.mubr.f32.vlgmr.msra.gmra.mrb[0].mxu1 %v145_v60  ;;  %v449_v60 = vld [vmem:[#allocation4 + $0x1f0] sm:$0xff] }
 0x117   :  { %986 = vmatpush3.bf16.msra.mxu1 %v983_v3  ;;  %v1039_v63 = vpack.c.bf16 %v450_v61, %v449_v60  ;;  %v535_v3 = vld [vmem:[#allocation4 + $0x218] sm:$0xff] }
 0x118   :  { %988 = vmatprep.subr.bf16.mxu1 %v987_v5 }
 0x11b   :  { %990 = vmatpush3.bf16.msra.mxu1 %v987_v5  ;;  %v1047_v5 = vpack.c.bf16 %v535_v3, %v534_v2 }
 0x11c   :  { %992 = vmatprep.subr.bf16.mxu1 %v991_v8 }
 0x11f   :  { %994 = vmatpush3.bf16.msra.mxu1 %v991_v8  ;;  %v538_v8 = vld [vmem:[#allocation4 + $0x230] sm:$0xff] }
 0x120   :  { %996 = vmatprep.subr.bf16.mxu1 %v995_v11  ;;  %v1055_v10 = vpack.c.bf16 %v539_v9, %v538_v8 }
 0x123   :  { %998 = vmatpush3.bf16.msra.mxu1 %v995_v11  ;;  %v540_v11 = vld [vmem:[#allocation4 + $0x240] sm:$0xff] }
 0x124   :  { %1000 = vmatprep.subr.bf16.mxu1 %v999_v14  ;;  %v1059_v13 = vpack.c.bf16 %v541_v12, %v540_v11 }
 0x127   :  { %1002 = vmatpush3.bf16.msra.mxu1 %v999_v14  ;;  %v358_v14 = vsub.s32 3, %v1232_v51 }
 0x128   :  { %1004 = vmatprep.subr.bf16.mxu1 %v1003_v17 }
 0x129   :  { %v359_v15 = vrot.slane %v1235_v53, %v358_v14 }
 0x12b   :  { %1006 = vmatpush3.bf16.msra.mxu1 %v1003_v17 }
 0x12c   :  { %1008 = vmatprep.subr.bf16.mxu1 %v1007_v20 }
 0x12f   :  { %1010 = vmatpush3.bf16.msra.mxu1 %v1007_v20 }
 0x130   :  { %1012 = vmatprep.subr.bf16.mxu1 %v1011_v31 }
 0x133   :  { %1014 = vmatpush3.bf16.msra.mxu1 %v1011_v31 }
 0x134   :  { %1048 = vmatprep.subr.bf16.mxu1 %v1047_v5 }
 0x1e9   :  { %v774_v23 = vpop.f32.mrb[0].mxu1 }
 0x1ea   :  { %v238_v24 = vadd.f32 %v774_v23, %v165_v22  ;;  %v232_v25 = vpop.f32.mrb[1].mxu1  ;;  %v543_v23 = vld [vmem:[#allocation4 + $0x258] sm:$0xff] }
 0x1eb   :  { %v233_v26 = vadd.f32 %v232_v25, %v165_v22  ;;  %v542_v22 = vld [vmem:[#allocation4 + $0x250] sm:$0xff]  ;;  %v544_v25 = vld [vmem:[#allocation4 + $0x260] sm:$0xff] }
 0x1ec   :  { %v242_v28 = vmax.f32 %v238_v24, 0.0  ;;  %v1063_v24 = vpack.c.bf16 %v543_v23, %v542_v22 }
 0x1ed   :  { %v241_v27 = vmax.f32 %v233_v26, 0.0  ;;  %v545_v26 = vld [vmem:[#allocation4 + $0x268] sm:$0xff] }
 0x1ef   :  { %807 = vmatprep.mubr.f32.mxu0 %v241_v27  ;;  %v1067_v27 = vpack.c.bf16 %v545_v26, %v544_v25 }
 0x1f0   :  { %808 = vmatmul.mubr.f32.vlgmr.msra.gmra.mrb[2].mxu0 %v242_v28  ;;  %v546_v28 = vld [vmem:[#allocation4 + $0x270] sm:$0xff] }
 0x1f1   :  { %1018 = vmatpush3.bf16.msra.mxu0 %v1015_v35  ;;  %v1071_v31 = vpack.c.bf16 %v547_v29, %v546_v28  ;;  %v456_v35 = vrot.slane %v1235_v53, %v455_v34 }
 0x1f2   :  { %1020 = vmatprep.subr.bf16.mxu0 %v1019_v37 }
 0x1f5   :  { %1022 = vmatpush3.bf16.msra.mxu0 %v1019_v37 }
 0x1f6   :  { %1024 = vmatprep.subr.bf16.mxu0 %v1023_v40 }
 0x1f9   :  { %1026 = vmatpush3.bf16.msra.mxu0 %v1023_v40 }
 0x1fa   :  { %1028 = vmatprep.subr.bf16.mxu0 %v1027_v43 }
 0x1fd   :  { %1030 = vmatpush3.bf16.msra.mxu0 %v1027_v43  ;;  %v553_v43 = vrot.slane %v1235_v53, %v552_v42 }
 0x1fe   :  { %1032 = vmatprep.subr.bf16.mxu0 %v1031_v56 }
 0x201   :  { %1034 = vmatpush3.bf16.msra.mxu0 %v1031_v56 }
 0x202   :  { %1036 = vmatprep.subr.bf16.mxu0 %v1035_v59 }
 0x205   :  { %1038 = vmatpush3.bf16.msra.mxu0 %v1035_v59 }
 0x206   :  { %1040 = vmatprep.subr.bf16.mxu0 %v1039_v63 }
 0x209   :  { %1042 = vmatpush3.bf16.msra.mxu0 %v1039_v63 }
 0x20a   :  { %1044 = vmatprep.subr.bf16.mxu0 %v1043_v1 }
 0x20d   :  { %1046 = vmatpush3.bf16.msra.mxu0 %v1043_v1 }
 0x2c3   :  { %v809_v46 = vpop.f32.mrb[2].mxu0 }
 0x2c4   :  { %v335_v47 = vadd.f32 %v809_v46, %v262_v45  ;;  %v329_v48 = vpop.f32.mrb[3].mxu0 }
 0x2c5   :  { %v330_v49 = vadd.f32 %v329_v48, %v262_v45 }
 0x2c6   :  { %v339_v52 = vmax.f32 %v335_v47, 0.0 }
 0x2c7   :  { %v338_v50 = vmax.f32 %v330_v49, 0.0 }
 0x2c9   :  { %842 = vmatprep.mubr.f32.mxu1 %v338_v50 }
 0x2ca   :  { %843 = vmatmul.mubr.f32.vlgmr.msra.gmra.mrb[2].mxu1 %v339_v52 }
 0x2cb   :  { %1050 = vmatpush3.bf16.msra.mxu1 %v1047_v5 }
 0x2cc   :  { %1052 = vmatprep.subr.bf16.mxu1 %v1051_v7 }
 0x2cf   :  { %1054 = vmatpush3.bf16.msra.mxu1 %v1051_v7 }
 0x2d0   :  { %1056 = vmatprep.subr.bf16.mxu1 %v1055_v10 }
 0x2d3   :  { %1058 = vmatpush3.bf16.msra.mxu1 %v1055_v10 }
 0x2d4   :  { %1060 = vmatprep.subr.bf16.mxu1 %v1059_v13 }
 0x2d7   :  { %1062 = vmatpush3.bf16.msra.mxu1 %v1059_v13 }
 0x2d8   :  { %1064 = vmatprep.subr.bf16.mxu1 %v1063_v24 }
 0x2db   :  { %1066 = vmatpush3.bf16.msra.mxu1 %v1063_v24 }
 0x2dc   :  { %1068 = vmatprep.subr.bf16.mxu1 %v1067_v27 }
 0x2df   :  { %1070 = vmatpush3.bf16.msra.mxu1 %v1067_v27 }
 0x2e0   :  { %1072 = vmatprep.subr.bf16.mxu1 %v1071_v31 }
 0x2e3   :  { %1074 = vmatpush3.bf16.msra.mxu1 %v1071_v31 }
 0x2e4   :  { %1076 = vmatprep.subr.bf16.mxu1 %v1075_v33 }
 0x2e7   :  { %1078 = vmatpush3.bf16.msra.mxu1 %v1075_v33 }
 0x39d   :  { %v844_v16 = vpop.f32.mrb[2].mxu1 }
 0x39e   :  { %v432_v17 = vadd.f32 %v844_v16, %v359_v15  ;;  %v426_v18 = vpop.f32.mrb[3].mxu1 }
 0x39f   :  { %v427_v19 = vadd.f32 %v426_v18, %v359_v15 }
 0x3a1   :  { %1084 = vtanh.f32 %v427_v19 }
 0x3a2   :  { %1086 = vtanh.f32 %v432_v17 }
 0x3ab   :  { %v1085_v20 = vpop.eup %1084 }
 0x3ac   :  { %v1087_v21 = vpop.eup %1086  ;;  %877 = vmatprep.mubr.f32.mxu0 %v1085_v20 }
 0x3ad   :  { %878 = vmatmul.mubr.f32.vlgmr.msra.gmra.mrb[4].mxu0 %v1087_v21 }
 0x480   :  { %v879_v36 = vpop.f32.mrb[4].mxu0 }
 0x481   :  { %v529_v37 = vadd.f32 %v879_v36, %v456_v35  ;;  %v523_v38 = vpop.f32.mrb[5].mxu0 }
 0x482   :  { %v524_v39 = vadd.f32 %v523_v38, %v456_v35 }
 0x484   :  { %1088 = vtanh.f32 %v524_v39 }
 0x485   :  { %1090 = vtanh.f32 %v529_v37 }
 0x48e   :  { %v1089_v40 = vpop.eup %1088 }
 0x48f   :  { %v1091_v41 = vpop.eup %1090  ;;  %912 = vmatprep.mubr.f32.mxu1 %v1089_v40 }
 0x490   :  { %913 = vmatmul.mubr.f32.vlgmr.msra.gmra.mrb[4].mxu1 %v1091_v41 }
 0x563   :  { %v914_v44 = vpop.f32.mrb[4].mxu1 }
 0x564   :  { %v626_v45 = vadd.f32 %v914_v44, %v553_v43  ;;  %v620_v46 = vpop.f32.mrb[5].mxu1 }
 0x565   :  { %v621_v47 = vadd.f32 %v620_v46, %v553_v43 }
 0x566   :  { %630 = vst [vmem:[%s1257_s3 + $0x8] sm:$0xff] %v626_v45 }
 0x567   :  { %629 = vst [vmem:[%s1257_s3] sm:$0xff] %v621_v47 }
 0x568   :  { %635 = vsyncpa [#allocation3], 1 }
 0x569   :  { %636 = vsyncpa [#allocation5], 1 }

</bundles_post_ra>
